<compile_context>
chip_gen: v6e
topology: v6e:2x2x1
jax: 0.10.0
libtpu: 0.0.40
codegen_flags: <defaults>
</compile_context>

<pallas_src>
import numpy as np
import jax
import jax.numpy as jnp
from jax import lax
from jax.experimental import pallas as pl
from jax.experimental.pallas import tpu as pltpu


def _round_up(x, m):
    return int(-(-int(x) // int(m)) * int(m))


# ------------------------- kernel 1: LSTM recurrence -------------------------

def make_recurrence_kernel(num_layers, seq_len, hidden):
    H = hidden

    def kernel(feat_ref, emb_ref, *refs):
        # refs layout: per layer (w_ih (in,4H) bf16, w_hh (H,4H) bf16, b (1,4H) f32),
        #              then out_ref (T, B_pad, H) bf16, h_state (L,B_pad,H) f32,
        #              c_state (L,B_pad,H) f32
        w_ih, w_hh, bias = [], [], []
        k = 0
        for _ in range(num_layers):
            w_ih.append(refs[k][...])
            w_hh.append(refs[k + 1][...])
            bias.append(refs[k + 2][...])
            k += 3
        out_ref, h_ref, c_ref = refs[k], refs[k + 1], refs[k + 2]

        # ---- features step: zero initial state -> input matmul only, no f*c term ----
        x = feat_ref[...]                                           # (B_pad, E) bf16
        for l in range(num_layers):
            gates = jnp.dot(x, w_ih[l], preferred_element_type=jnp.float32) + bias[l]
            sig = jax.nn.sigmoid(gates[:, :3 * H])                  # (i, f, o) lanes only
            g = jnp.tanh(gates[:, 3 * H:])                          # g lanes only
            i = sig[:, :H]
            o = sig[:, 2 * H:3 * H]
            c_new = i * g                                           # f*c term vanishes (c=0)
            h_new = o * jnp.tanh(c_new)
            h_ref[l] = h_new
            c_ref[l] = c_new
            x = h_new.astype(x.dtype)

        # ---- caption steps: strictly sequential recurrence, state lives in VMEM ----
        def step(t, carry):
            x = emb_ref[t]                                          # (B_pad, E) bf16
            for l in range(num_layers):
                h_prev = h_ref[l]
                gates = (jnp.dot(x, w_ih[l], preferred_element_type=jnp.float32)
                         + jnp.dot(h_prev.astype(x.dtype), w_hh[l],
                                   preferred_element_type=jnp.float32)
                         + bias[l])
                sig = jax.nn.sigmoid(gates[:, :3 * H])              # i, f, o
                g = jnp.tanh(gates[:, 3 * H:])                      # g
                i = sig[:, :H]
                f = sig[:, H:2 * H]
                o = sig[:, 2 * H:3 * H]
                c_new = f * c_ref[l] + i * g
                h_new = o * jnp.tanh(c_new)
                h_ref[l] = h_new
                c_ref[l] = c_new
                x = h_new.astype(x.dtype)
            out_ref[t] = x                                          # top-layer h, this step
            return carry

        lax.fori_loop(0, seq_len, step, 0)

    return kernel


# ------------------------- kernel 2: tiled vocab head -------------------------

def head_kernel(h_ref, w_ref, b_ref, o_ref):
    o_ref[...] = (jnp.dot(h_ref[...], w_ref[...], preferred_element_type=jnp.float32)
                  + b_ref[...])


# ------------------------- wrapper -------------------------

def decoder_rnn_forward(features, captions, lengths, params):
    """Mirrors DecoderRNN.forward. Returns (sum(lengths), vocab) packed logits."""
    embed_table = params["embed"]              # (V, E)
    layer_params = params["lstm"]              # [(w_ih(4H,in), w_hh(4H,H), b_ih, b_hh)]
    lin_w, lin_b = params["linear"]            # (V, H), (V,)

    B, T = captions.shape
    V, E = embed_table.shape
    H = lin_w.shape[1]
    L = len(layer_params)

    lengths_np = np.asarray(lengths)
    assert np.all(np.diff(lengths_np) <= 0), "lengths must be sorted descending"
    T_eff = int(lengths_np[0])                 # pack_padded_sequence length = max(lengths)
    S = int(lengths_np.sum())                  # number of packed rows

    B_pad = _round_up(B, 16)                   # bf16 sublane packing -> unmasked tiles
    TILE_R = 256 if S > 256 else _round_up(S, 8)
    S_pad = _round_up(S, TILE_R)
    V_lane = _round_up(V, 128)
    TILE_V = 2048 if V_lane > 2048 else V_lane # fits VMEM on v5e/v6e/v7x
    V_pad = _round_up(V_lane, TILE_V)

    def reorder_gates(w):                      # PyTorch (i,f,g,o) columns -> (i,f,o,g)
        return jnp.concatenate([w[..., :H], w[..., H:2 * H],
                                w[..., 3 * H:], w[..., 2 * H:3 * H]], axis=-1)

    # glue: embedding gather, time-major transpose, batch padding, bf16 operand casts
    emb = jnp.take(embed_table, captions[:, :T_eff], axis=0)        # (B, T_eff, E)
    emb_tm = jnp.transpose(emb, (1, 0, 2))                           # (T_eff, B, E)
    emb_tm = jnp.pad(emb_tm, ((0, 0), (0, B_pad - B), (0, 0))).astype(jnp.bfloat16)
    feat = jnp.pad(features, ((0, B_pad - B), (0, 0))).astype(jnp.bfloat16)

    kernel_args = [feat, emb_tm]
    for (w_ih, w_hh, b_ih, b_hh) in layer_params:
        kernel_args.append(reorder_gates(jnp.transpose(w_ih)).astype(jnp.bfloat16))  # (in,4H)
        kernel_args.append(reorder_gates(jnp.transpose(w_hh)).astype(jnp.bfloat16))  # (H,4H)
        kernel_args.append(reorder_gates((b_ih + b_hh).reshape(1, -1)).astype(jnp.float32))

    rec_bytes = sum(int(a.size) * a.dtype.itemsize for a in kernel_args)
    rec_bytes += T_eff * B_pad * H * 2 + 2 * L * B_pad * H * 4      # out + h/c scratch
    rec_vmem = int(min(2 * rec_bytes + (8 << 20), 64 << 20))

    h_all = pl.pallas_call(
        make_recurrence_kernel(L, T_eff, H),
        out_shape=jax.ShapeDtypeStruct((T_eff, B_pad, H), jnp.bfloat16),
        in_specs=[pl.BlockSpec(memory_space=pltpu.MemorySpace.VMEM)] * len(kernel_args),
        out_specs=pl.BlockSpec(memory_space=pltpu.MemorySpace.VMEM),
        scratch_shapes=[pltpu.VMEM((L, B_pad, H), jnp.float32),      # h state
                        pltpu.VMEM((L, B_pad, H), jnp.float32)],     # c state
        compiler_params=pltpu.CompilerParams(vmem_limit_bytes=rec_vmem),
    )(*kernel_args)                                                  # (T_eff, B_pad, H)

    # glue: pack_padded_sequence row order gathered from the SMALL (T*B_pad, H) hidden
    # matrix (not the logits), so the head only computes/writes sum(lengths) rows.
    flat_idx = np.array([t * B_pad + b
                         for t in range(T_eff) for b in range(B) if lengths_np[b] > t],
                        dtype=np.int32)
    h_packed = jnp.take(h_all.reshape(T_eff * B_pad, H), jnp.asarray(flat_idx), axis=0)
    h_packed = jnp.pad(h_packed, ((0, S_pad - S), (0, 0)))           # (S_pad, H) bf16

    lin_w_t = jnp.pad(jnp.transpose(lin_w), ((0, 0), (0, V_pad - V))).astype(jnp.bfloat16)
    lin_b_row = jnp.pad(lin_b, (0, V_pad - V)).reshape(1, -1).astype(jnp.float32)

    head_vmem = int(min(2 * (TILE_R * H * 2 + H * TILE_V * 2 + TILE_V * 4
                             + TILE_R * TILE_V * 4) + (4 << 20), 64 << 20))
    logits = pl.pallas_call(
        head_kernel,
        out_shape=jax.ShapeDtypeStruct((S_pad, V_pad), jnp.float32),
        grid=(S_pad // TILE_R, V_pad // TILE_V),
        in_specs=[pl.BlockSpec((TILE_R, H), lambda r, v: (r, 0)),
                  pl.BlockSpec((H, TILE_V), lambda r, v: (0, v)),
                  pl.BlockSpec((1, TILE_V), lambda r, v: (0, v))],
        out_specs=pl.BlockSpec((TILE_R, TILE_V), lambda r, v: (r, v)),
        compiler_params=pltpu.CompilerParams(
            dimension_semantics=("parallel", "parallel"),
            vmem_limit_bytes=head_vmem),
    )(h_packed, lin_w_t, lin_b_row)                                  # (S_pad, V_pad)

    return logits[:S, :V]


# ------------------------- pure-JAX reference (mirrors bf16 operand casts) -------------------------

def reference_forward(features, captions, lengths, params):
    embed_table = params["embed"]
    layer_params = params["lstm"]
    lin_w, lin_b = params["linear"]
    B, T = captions.shape
    H = lin_w.shape[1]
    L = len(layer_params)
    bf = jnp.bfloat16

    def mm(a, b):
        return jnp.dot(a.astype(bf), b.astype(bf), preferred_element_type=jnp.float32)

    def cell(x, h, c, w_ih, w_hh, b_ih, b_hh):
        gates = mm(x, w_ih.T) + mm(h, w_hh.T) + (b_ih + b_hh).reshape(1, -1)
        i, f, g, o = jnp.split(gates, 4, axis=1)
        c_new = jax.nn.sigmoid(f) * c + jax.nn.sigmoid(i) * jnp.tanh(g)
        h_new = jax.nn.sigmoid(o) * jnp.tanh(c_new)
        return h_new, c_new

    h = [jnp.zeros((B, H), jnp.float32) for _ in range(L)]
    c = [jnp.zeros((B, H), jnp.float32) for _ in range(L)]
    x = features.astype(jnp.float32)
    for l in range(L):
        h[l], c[l] = cell(x, h[l], c[l], *layer_params[l])
        x = h[l]

    emb = jnp.take(embed_table, captions, axis=0)
    lengths_np = np.asarray(lengths)
    T_eff = int(lengths_np[0])
    outs = []
    for t in range(T_eff):
        x = emb[:, t, :]
        for l in range(L):
            h[l], c[l] = cell(x, h[l], c[l], *layer_params[l])
            x = h[l]
        logits_t = mm(x, lin_w.T) + lin_b.reshape(1, -1)
        for b in range(B):
            if lengths_np[b] > t:
                outs.append(logits_t[b])
    return jnp.stack(outs, axis=0)


# ------------------------- main -------------------------

if __name__ == "__main__":
    embed_size, hidden_size, vocab_size, num_layers = 32, 32, 128, 2
    B, T = 4, 8
    lengths = [8, 6, 5, 3]                     # sorted descending (pack_padded_sequence)

    key = jax.random.PRNGKey(0)
    ks = list(jax.random.split(key, 4 * num_layers + 5))
    scale = 1.0 / np.sqrt(hidden_size)

    def u(k, shape):
        return jax.random.uniform(k, shape, jnp.float32, -scale, scale)

    embed_table = u(ks[0], (vocab_size, embed_size))
    lstm_params = []
    for l in range(num_layers):
        in_dim = embed_size if l == 0 else hidden_size
        base = 1 + 4 * l
        lstm_params.append((
            u(ks[base + 0], (4 * hidden_size, in_dim)),       # w_ih
            u(ks[base + 1], (4 * hidden_size, hidden_size)),  # w_hh
            u(ks[base + 2], (4 * hidden_size,)),              # b_ih
            u(ks[base + 3], (4 * hidden_size,)),              # b_hh
        ))
    lin_w = u(ks[1 + 4 * num_layers], (vocab_size, hidden_size))
    lin_b = u(ks[2 + 4 * num_layers], (vocab_size,))
    params = {"embed": embed_table, "lstm": lstm_params, "linear": (lin_w, lin_b)}

    features = jax.random.normal(ks[3 + 4 * num_layers], (B, embed_size), jnp.float32)
    captions = jax.random.randint(ks[4 + 4 * num_layers], (B, T), 0, vocab_size,
                                  dtype=jnp.int32)

    out = decoder_rnn_forward(features, captions, lengths, params)
    out = jax.block_until_ready(out)
    assert out.shape == (sum(lengths), vocab_size), out.shape

    ref = reference_forward(features, captions, lengths, params)
    np.testing.assert_allclose(np.asarray(out, dtype=np.float32),
                               np.asarray(ref, dtype=np.float32),
                               rtol=2e-2, atol=2e-2)

    print("KERNEL_OK")
</pallas_src>

<mosaic_0001>
module attributes {stable_mosaic.version = 11 : i64} {
  func.func @kernel(%arg0: memref<16x32xbf16, #tpu.memory_space<vmem>>, %arg1: memref<8x16x32xbf16, #tpu.memory_space<vmem>>, %arg2: memref<32x128xbf16, #tpu.memory_space<vmem>>, %arg3: memref<32x128xbf16, #tpu.memory_space<vmem>>, %arg4: memref<1x128xf32, #tpu.memory_space<vmem>>, %arg5: memref<32x128xbf16, #tpu.memory_space<vmem>>, %arg6: memref<32x128xbf16, #tpu.memory_space<vmem>>, %arg7: memref<1x128xf32, #tpu.memory_space<vmem>>, %arg8: memref<8x16x32xbf16, #tpu.memory_space<vmem>>, %arg9: memref<2x16x32xf32, #tpu.memory_space<vmem>>, %arg10: memref<2x16x32xf32, #tpu.memory_space<vmem>>) attributes {dimension_semantics = [], scalar_prefetch = 0 : i64, scratch_operands = 2 : i64, tpu.core_type = #tpu.core_type<tc>} {
    %c0 = arith.constant 0 : index
    %c0_0 = arith.constant 0 : index
    %0 = vector.load %arg2[%c0, %c0_0] : memref<32x128xbf16, #tpu.memory_space<vmem>>, vector<32x128xbf16>
    %c0_1 = arith.constant 0 : index
    %c0_2 = arith.constant 0 : index
    %1 = vector.load %arg3[%c0_1, %c0_2] : memref<32x128xbf16, #tpu.memory_space<vmem>>, vector<32x128xbf16>
    %c0_3 = arith.constant 0 : index
    %c0_4 = arith.constant 0 : index
    %2 = vector.load %arg4[%c0_3, %c0_4] : memref<1x128xf32, #tpu.memory_space<vmem>>, vector<1x128xf32>
    %c0_5 = arith.constant 0 : index
    %c0_6 = arith.constant 0 : index
    %3 = vector.load %arg5[%c0_5, %c0_6] : memref<32x128xbf16, #tpu.memory_space<vmem>>, vector<32x128xbf16>
    %c0_7 = arith.constant 0 : index
    %c0_8 = arith.constant 0 : index
    %4 = vector.load %arg6[%c0_7, %c0_8] : memref<32x128xbf16, #tpu.memory_space<vmem>>, vector<32x128xbf16>
    %c0_9 = arith.constant 0 : index
    %c0_10 = arith.constant 0 : index
    %5 = vector.load %arg7[%c0_9, %c0_10] : memref<1x128xf32, #tpu.memory_space<vmem>>, vector<1x128xf32>
    %c0_11 = arith.constant 0 : index
    %c0_12 = arith.constant 0 : index
    %6 = vector.load %arg0[%c0_11, %c0_12] : memref<16x32xbf16, #tpu.memory_space<vmem>>, vector<16x32xbf16>
    %cst = arith.constant dense<0.000000e+00> : vector<16x128xf32>
    %7 = tpu.matmul %6, %0, %cst {dimension_numbers = #tpu.dot_dimension_numbers<[1], [0], [0], [1], [0, 0, 1, 1], [], []>} : vector<16x32xbf16>, vector<32x128xbf16>, vector<16x128xf32> -> vector<16x128xf32>
    %8 = vector.broadcast %2 : vector<1x128xf32> to vector<16x128xf32>
    %9 = arith.addf %7, %8 : vector<16x128xf32>
    %10 = vector.extract_strided_slice %9 {offsets = [0, 0], sizes = [16, 96], strides = [1, 1]} : vector<16x128xf32> to vector<16x96xf32>
    %11 = arith.negf %10 : vector<16x96xf32>
    %12 = math.exp %11 : vector<16x96xf32>
    %cst_13 = arith.constant 1.000000e+00 : f32
    %13 = vector.broadcast %cst_13 : f32 to vector<16x96xf32>
    %14 = arith.addf %13, %12 : vector<16x96xf32>
    %15 = arith.divf %13, %14 : vector<16x96xf32>
    %16 = vector.extract_strided_slice %9 {offsets = [0, 96], sizes = [16, 32], strides = [1, 1]} : vector<16x128xf32> to vector<16x32xf32>
    %17 = math.tanh %16 : vector<16x32xf32>
    %18 = vector.extract_strided_slice %15 {offsets = [0, 0], sizes = [16, 32], strides = [1, 1]} : vector<16x96xf32> to vector<16x32xf32>
    %19 = vector.extract_strided_slice %15 {offsets = [0, 64], sizes = [16, 32], strides = [1, 1]} : vector<16x96xf32> to vector<16x32xf32>
    %20 = arith.mulf %18, %17 : vector<16x32xf32>
    %21 = math.tanh %20 : vector<16x32xf32>
    %22 = arith.mulf %19, %21 : vector<16x32xf32>
    %c0_14 = arith.constant 0 : index
    %c0_15 = arith.constant 0 : index
    %c0_16 = arith.constant 0 : index
    %23 = vector.load %arg9[%c0_14, %c0_15, %c0_16] : memref<2x16x32xf32, #tpu.memory_space<vmem>>, vector<1x16x32xf32>
    %24 = vector.shape_cast %23 : vector<1x16x32xf32> to vector<16x32xf32>
    %25 = vector.shape_cast %22 : vector<16x32xf32> to vector<1x16x32xf32>
    tpu.vector_store %arg9[%c0_14, %c0_15, %c0_16], %25 {strides = array<i32>} : memref<2x16x32xf32, #tpu.memory_space<vmem>>, vector<1x16x32xf32>,
    %c0_17 = arith.constant 0 : index
    %c0_18 = arith.constant 0 : index
    %c0_19 = arith.constant 0 : index
    %26 = vector.load %arg10[%c0_17, %c0_18, %c0_19] : memref<2x16x32xf32, #tpu.memory_space<vmem>>, vector<1x16x32xf32>
    %27 = vector.shape_cast %26 : vector<1x16x32xf32> to vector<16x32xf32>
    %28 = vector.shape_cast %20 : vector<16x32xf32> to vector<1x16x32xf32>
    tpu.vector_store %arg10[%c0_17, %c0_18, %c0_19], %28 {strides = array<i32>} : memref<2x16x32xf32, #tpu.memory_space<vmem>>, vector<1x16x32xf32>,
    %29 = arith.truncf %22 : vector<16x32xf32> to vector<16x32xbf16>
    %cst_20 = arith.constant dense<0.000000e+00> : vector<16x128xf32>
    %30 = tpu.matmul %29, %3, %cst_20 {dimension_numbers = #tpu.dot_dimension_numbers<[1], [0], [0], [1], [0, 0, 1, 1], [], []>} : vector<16x32xbf16>, vector<32x128xbf16>, vector<16x128xf32> -> vector<16x128xf32>
    %31 = vector.broadcast %5 : vector<1x128xf32> to vector<16x128xf32>
    %32 = arith.addf %30, %31 : vector<16x128xf32>
    %33 = vector.extract_strided_slice %32 {offsets = [0, 0], sizes = [16, 96], strides = [1, 1]} : vector<16x128xf32> to vector<16x96xf32>
    %34 = arith.negf %33 : vector<16x96xf32>
    %35 = math.exp %34 : vector<16x96xf32>
    %cst_21 = arith.constant 1.000000e+00 : f32
    %36 = vector.broadcast %cst_21 : f32 to vector<16x96xf32>
    %37 = arith.addf %36, %35 : vector<16x96xf32>
    %38 = arith.divf %36, %37 : vector<16x96xf32>
    %39 = vector.extract_strided_slice %32 {offsets = [0, 96], sizes = [16, 32], strides = [1, 1]} : vector<16x128xf32> to vector<16x32xf32>
    %40 = math.tanh %39 : vector<16x32xf32>
    %41 = vector.extract_strided_slice %38 {offsets = [0, 0], sizes = [16, 32], strides = [1, 1]} : vector<16x96xf32> to vector<16x32xf32>
    %42 = vector.extract_strided_slice %38 {offsets = [0, 64], sizes = [16, 32], strides = [1, 1]} : vector<16x96xf32> to vector<16x32xf32>
    %43 = arith.mulf %41, %40 : vector<16x32xf32>
    %44 = math.tanh %43 : vector<16x32xf32>
    %45 = arith.mulf %42, %44 : vector<16x32xf32>
    %c1 = arith.constant 1 : index
    %c0_22 = arith.constant 0 : index
    %c0_23 = arith.constant 0 : index
    %46 = vector.load %arg9[%c1, %c0_22, %c0_23] : memref<2x16x32xf32, #tpu.memory_space<vmem>>, vector<1x16x32xf32>
    %47 = vector.shape_cast %46 : vector<1x16x32xf32> to vector<16x32xf32>
    %48 = vector.shape_cast %45 : vector<16x32xf32> to vector<1x16x32xf32>
    tpu.vector_store %arg9[%c1, %c0_22, %c0_23], %48 {strides = array<i32>} : memref<2x16x32xf32, #tpu.memory_space<vmem>>, vector<1x16x32xf32>,
    %c1_24 = arith.constant 1 : index
    %c0_25 = arith.constant 0 : index
    %c0_26 = arith.constant 0 : index
    %49 = vector.load %arg10[%c1_24, %c0_25, %c0_26] : memref<2x16x32xf32, #tpu.memory_space<vmem>>, vector<1x16x32xf32>
    %50 = vector.shape_cast %49 : vector<1x16x32xf32> to vector<16x32xf32>
    %51 = vector.shape_cast %43 : vector<16x32xf32> to vector<1x16x32xf32>
    tpu.vector_store %arg10[%c1_24, %c0_25, %c0_26], %51 {strides = array<i32>} : memref<2x16x32xf32, #tpu.memory_space<vmem>>, vector<1x16x32xf32>,
    %c0_i32 = arith.constant 0 : i32
    %c8_i32 = arith.constant 8 : i32
    %52 = arith.addi %c0_i32, %c8_i32 : i32
    %c1_i32 = arith.constant 1 : i32
    scf.for %arg11 = %c0_i32 to %52 step %c1_i32  : i32 {
      %53 = arith.index_cast %arg11 : i32 to index
      %c0_28 = arith.constant 0 : index
      %c0_29 = arith.constant 0 : index
      %54 = vector.load %arg1[%53, %c0_28, %c0_29] : memref<8x16x32xbf16, #tpu.memory_space<vmem>>, vector<1x16x32xbf16>
      %55 = vector.shape_cast %54 : vector<1x16x32xbf16> to vector<16x32xbf16>
      %c0_30 = arith.constant 0 : index
      %c0_31 = arith.constant 0 : index
      %c0_32 = arith.constant 0 : index
      %56 = vector.load %arg9[%c0_30, %c0_31, %c0_32] : memref<2x16x32xf32, #tpu.memory_space<vmem>>, vector<1x16x32xf32>
      %57 = vector.shape_cast %56 : vector<1x16x32xf32> to vector<16x32xf32>
      %cst_33 = arith.constant dense<0.000000e+00> : vector<16x128xf32>
      %58 = tpu.matmul %55, %0, %cst_33 {dimension_numbers = #tpu.dot_dimension_numbers<[1], [0], [0], [1], [0, 0, 1, 1], [], []>} : vector<16x32xbf16>, vector<32x128xbf16>, vector<16x128xf32> -> vector<16x128xf32>
      %59 = arith.truncf %57 : vector<16x32xf32> to vector<16x32xbf16>
      %cst_34 = arith.constant dense<0.000000e+00> : vector<16x128xf32>
      %60 = tpu.matmul %59, %1, %cst_34 {dimension_numbers = #tpu.dot_dimension_numbers<[1], [0], [0], [1], [0, 0, 1, 1], [], []>} : vector<16x32xbf16>, vector<32x128xbf16>, vector<16x128xf32> -> vector<16x128xf32>
      %61 = arith.addf %58, %60 : vector<16x128xf32>
      %62 = vector.broadcast %2 : vector<1x128xf32> to vector<16x128xf32>
      %63 = arith.addf %61, %62 : vector<16x128xf32>
      %64 = vector.extract_strided_slice %63 {offsets = [0, 0], sizes = [16, 96], strides = [1, 1]} : vector<16x128xf32> to vector<16x96xf32>
      %65 = arith.negf %64 : vector<16x96xf32>
      %66 = math.exp %65 : vector<16x96xf32>
      %cst_35 = arith.constant 1.000000e+00 : f32
      %67 = vector.broadcast %cst_35 : f32 to vector<16x96xf32>
      %68 = arith.addf %67, %66 : vector<16x96xf32>
      %69 = arith.divf %67, %68 : vector<16x96xf32>
      %70 = vector.extract_strided_slice %63 {offsets = [0, 96], sizes = [16, 32], strides = [1, 1]} : vector<16x128xf32> to vector<16x32xf32>
      %71 = math.tanh %70 : vector<16x32xf32>
      %72 = vector.extract_strided_slice %69 {offsets = [0, 0], sizes = [16, 32], strides = [1, 1]} : vector<16x96xf32> to vector<16x32xf32>
      %73 = vector.extract_strided_slice %69 {offsets = [0, 32], sizes = [16, 32], strides = [1, 1]} : vector<16x96xf32> to vector<16x32xf32>
      %74 = vector.extract_strided_slice %69 {offsets = [0, 64], sizes = [16, 32], strides = [1, 1]} : vector<16x96xf32> to vector<16x32xf32>
      %c0_36 = arith.constant 0 : index
      %c0_37 = arith.constant 0 : index
      %c0_38 = arith.constant 0 : index
      %75 = vector.load %arg10[%c0_36, %c0_37, %c0_38] : memref<2x16x32xf32, #tpu.memory_space<vmem>>, vector<1x16x32xf32>
      %76 = vector.shape_cast %75 : vector<1x16x32xf32> to vector<16x32xf32>
      %77 = arith.mulf %73, %76 : vector<16x32xf32>
      %78 = arith.mulf %72, %71 : vector<16x32xf32>
      %79 = arith.addf %77, %78 : vector<16x32xf32>
      %80 = math.tanh %79 : vector<16x32xf32>
      %81 = arith.mulf %74, %80 : vector<16x32xf32>
      %c0_39 = arith.constant 0 : index
      %c0_40 = arith.constant 0 : index
      %c0_41 = arith.constant 0 : index
      %82 = vector.load %arg9[%c0_39, %c0_40, %c0_41] : memref<2x16x32xf32, #tpu.memory_space<vmem>>, vector<1x16x32xf32>
      %83 = vector.shape_cast %82 : vector<1x16x32xf32> to vector<16x32xf32>
      %84 = vector.shape_cast %81 : vector<16x32xf32> to vector<1x16x32xf32>
      tpu.vector_store %arg9[%c0_39, %c0_40, %c0_41], %84 {strides = array<i32>} : memref<2x16x32xf32, #tpu.memory_space<vmem>>, vector<1x16x32xf32>,
      %c0_42 = arith.constant 0 : index
      %c0_43 = arith.constant 0 : index
      %c0_44 = arith.constant 0 : index
      %85 = vector.load %arg10[%c0_42, %c0_43, %c0_44] : memref<2x16x32xf32, #tpu.memory_space<vmem>>, vector<1x16x32xf32>
      %86 = vector.shape_cast %85 : vector<1x16x32xf32> to vector<16x32xf32>
      %87 = vector.shape_cast %79 : vector<16x32xf32> to vector<1x16x32xf32>
      tpu.vector_store %arg10[%c0_42, %c0_43, %c0_44], %87 {strides = array<i32>} : memref<2x16x32xf32, #tpu.memory_space<vmem>>, vector<1x16x32xf32>,
      %88 = arith.truncf %81 : vector<16x32xf32> to vector<16x32xbf16>
      %c1_45 = arith.constant 1 : index
      %c0_46 = arith.constant 0 : index
      %c0_47 = arith.constant 0 : index
      %89 = vector.load %arg9[%c1_45, %c0_46, %c0_47] : memref<2x16x32xf32, #tpu.memory_space<vmem>>, vector<1x16x32xf32>
      %90 = vector.shape_cast %89 : vector<1x16x32xf32> to vector<16x32xf32>
      %cst_48 = arith.constant dense<0.000000e+00> : vector<16x128xf32>
      %91 = tpu.matmul %88, %3, %cst_48 {dimension_numbers = #tpu.dot_dimension_numbers<[1], [0], [0], [1], [0, 0, 1, 1], [], []>} : vector<16x32xbf16>, vector<32x128xbf16>, vector<16x128xf32> -> vector<16x128xf32>
      %92 = arith.truncf %90 : vector<16x32xf32> to vector<16x32xbf16>
      %cst_49 = arith.constant dense<0.000000e+00> : vector<16x128xf32>
      %93 = tpu.matmul %92, %4, %cst_49 {dimension_numbers = #tpu.dot_dimension_numbers<[1], [0], [0], [1], [0, 0, 1, 1], [], []>} : vector<16x32xbf16>, vector<32x128xbf16>, vector<16x128xf32> -> vector<16x128xf32>
      %94 = arith.addf %91, %93 : vector<16x128xf32>
      %95 = vector.broadcast %5 : vector<1x128xf32> to vector<16x128xf32>
      %96 = arith.addf %94, %95 : vector<16x128xf32>
      %97 = vector.extract_strided_slice %96 {offsets = [0, 0], sizes = [16, 96], strides = [1, 1]} : vector<16x128xf32> to vector<16x96xf32>
      %98 = arith.negf %97 : vector<16x96xf32>
      %99 = math.exp %98 : vector<16x96xf32>
      %cst_50 = arith.constant 1.000000e+00 : f32
      %100 = vector.broadcast %cst_50 : f32 to vector<16x96xf32>
      %101 = arith.addf %100, %99 : vector<16x96xf32>
      %102 = arith.divf %100, %101 : vector<16x96xf32>
      %103 = vector.extract_strided_slice %96 {offsets = [0, 96], sizes = [16, 32], strides = [1, 1]} : vector<16x128xf32> to vector<16x32xf32>
      %104 = math.tanh %103 : vector<16x32xf32>
      %105 = vector.extract_strided_slice %102 {offsets = [0, 0], sizes = [16, 32], strides = [1, 1]} : vector<16x96xf32> to vector<16x32xf32>
      %106 = vector.extract_strided_slice %102 {offsets = [0, 32], sizes = [16, 32], strides = [1, 1]} : vector<16x96xf32> to vector<16x32xf32>
      %107 = vector.extract_strided_slice %102 {offsets = [0, 64], sizes = [16, 32], strides = [1, 1]} : vector<16x96xf32> to vector<16x32xf32>
      %c1_51 = arith.constant 1 : index
      %c0_52 = arith.constant 0 : index
      %c0_53 = arith.constant 0 : index
      %108 = vector.load %arg10[%c1_51, %c0_52, %c0_53] : memref<2x16x32xf32, #tpu.memory_space<vmem>>, vector<1x16x32xf32>
      %109 = vector.shape_cast %108 : vector<1x16x32xf32> to vector<16x32xf32>
      %110 = arith.mulf %106, %109 : vector<16x32xf32>
      %111 = arith.mulf %105, %104 : vector<16x32xf32>
      %112 = arith.addf %110, %111 : vector<16x32xf32>
      %113 = math.tanh %112 : vector<16x32xf32>
      %114 = arith.mulf %107, %113 : vector<16x32xf32>
      %c1_54 = arith.constant 1 : index
      %c0_55 = arith.constant 0 : index
      %c0_56 = arith.constant 0 : index
      %115 = vector.load %arg9[%c1_54, %c0_55, %c0_56] : memref<2x16x32xf32, #tpu.memory_space<vmem>>, vector<1x16x32xf32>
      %116 = vector.shape_cast %115 : vector<1x16x32xf32> to vector<16x32xf32>
      %117 = vector.shape_cast %114 : vector<16x32xf32> to vector<1x16x32xf32>
      tpu.vector_store %arg9[%c1_54, %c0_55, %c0_56], %117 {strides = array<i32>} : memref<2x16x32xf32, #tpu.memory_space<vmem>>, vector<1x16x32xf32>,
      %c1_57 = arith.constant 1 : index
      %c0_58 = arith.constant 0 : index
      %c0_59 = arith.constant 0 : index
      %118 = vector.load %arg10[%c1_57, %c0_58, %c0_59] : memref<2x16x32xf32, #tpu.memory_space<vmem>>, vector<1x16x32xf32>
      %119 = vector.shape_cast %118 : vector<1x16x32xf32> to vector<16x32xf32>
      %120 = vector.shape_cast %112 : vector<16x32xf32> to vector<1x16x32xf32>
      tpu.vector_store %arg10[%c1_57, %c0_58, %c0_59], %120 {strides = array<i32>} : memref<2x16x32xf32, #tpu.memory_space<vmem>>, vector<1x16x32xf32>,
      %121 = arith.truncf %114 : vector<16x32xf32> to vector<16x32xbf16>
      %122 = arith.index_cast %arg11 : i32 to index
      %c0_60 = arith.constant 0 : index
      %c0_61 = arith.constant 0 : index
      %123 = vector.load %arg8[%122, %c0_60, %c0_61] : memref<8x16x32xbf16, #tpu.memory_space<vmem>>, vector<1x16x32xbf16>
      %124 = vector.shape_cast %123 : vector<1x16x32xbf16> to vector<16x32xbf16>
      %125 = vector.shape_cast %121 : vector<16x32xbf16> to vector<1x16x32xbf16>
      tpu.vector_store %arg8[%122, %c0_60, %c0_61], %125 {strides = array<i32>} : memref<8x16x32xbf16, #tpu.memory_space<vmem>>, vector<1x16x32xbf16>,
    }
    %c8_i32_27 = arith.constant 8 : i32
    return
  }
}

</mosaic_0001>

<bundles_post_ra>
// kernel: tpu_custom_call.1
= control target key start
LH: loop header
LB: loop body
LE: loop exit
PB: predicated region body
PF: predicated region fallthrough
CT: control target
= control target key end

     0   :  { %13 = vsyncpa [#allocation5], 0  ;;  %s1408_s0 = inlined_call_operand.hbm [shape: bf16[16,32], index: 0, kind: input, shape index: {}]   ;;  %s1409_s1 = inlined_call_operand.hbm [shape: bf16[8,16,32], index: 1, kind: input, shape index: {}]   ;;  %s1410_s2 = inlined_call_operand.hbm [shape: bf16[32,128], index: 2, kind: input, shape index: {}]   ;;  %s1411_s3 = inlined_call_operand.hbm [shape: bf16[32,128], index: 3, kind: input, shape index: {}]   ;;  %s1412_s4 = inlined_call_operand.vmem [shape: f32[1,128], index: 4, kind: input, shape index: {}]   ;;  %s1413_s5 = inlined_call_operand.hbm [shape: bf16[32,128], index: 5, kind: input, shape index: {}]   ;;  %s1414_s6 = inlined_call_operand.hbm [shape: bf16[32,128], index: 6, kind: input, shape index: {}]   ;;  %s1415_s7 = inlined_call_operand.vmem [shape: f32[1,128], index: 7, kind: input, shape index: {}]   ;;  %s1416_s8 = inlined_call_operand.hbm [shape: bf16[8,16,32], index: 8, kind: output, shape index: {}]  }
   0x1   :  { %14 = vsyncpa [#allocation8], 0 }
   0x2   :  { %15 = vsyncpa [#allocation11], 0 }
   0x3   :  { %16 = vsyncpa [#allocation14], 0 }
   0x4   :  { %17 = vsyncpa [#allocation6], 0  ;;  %s1151_s27 = smov [#allocation7]   ;;  %s1152_s29 = smov [#allocation10]  }
   0x5   :  { %s35_s28 = sshll.u32 %s1151_s27, 4  ;;  %s59_s30 = sshll.u32 %s1152_s29, 4  ;;  %s36_s28 = int_to_ptr.vmem [resolvable:$true] %s35_s28  ;;  %s60_s30 = int_to_ptr.vmem [resolvable:$true] %s59_s30 }
   0x6   :  { %s1001_s9 = scalar_lea.vmem %s36_s28, 1024  ;;  %p1006_p1 = scmp.lt.s32.totalorder %s36_s28, %s36_s28 }
   0x7   :  { %p1002_p0 = scmp.ne.s32.totalorder %s36_s28, %s1001_s9  ;;  %p1007_p2 = scmp.lt.s32.totalorder %s1001_s9, %s1001_s9 }
   0x9   :  { %p1008_p3 = por %p1007_p2, %p1006_p1 }
   0xb   :  { %p1009_p4 = pnand %p1008_p3, %p1002_p0 }
   0xd   :  { %1012 = shalt.err (!%p1009_p4)
}
   0xe   :  { %s1153_s10 = smov 64   ;;  %s1154_s11 = smov 4  }
   0xf   :  { %41 = dma.hbm_to_vmem [thread:$0]  %s1409_s1, 1024, %s36_s28, [#allocation8], %s1153_s10, %s1153_s10, %s1154_s11  }
  0x10   :  { %s1021_s14 = scalar_lea.vmem %s60_s30, 256  ;;  %p1026_p6 = scmp.lt.s32.totalorder %s60_s30, %s60_s30 }
  0x11   :  { %p1022_p5 = scmp.ne.s32.totalorder %s60_s30, %s1021_s14  ;;  %p1027_p7 = scmp.lt.s32.totalorder %s1021_s14, %s1021_s14 }
  0x13   :  { %p1028_p8 = por %p1027_p7, %p1026_p6 }
  0x15   :  { %p1029_p9 = pnand %p1028_p8, %p1022_p5 }
  0x17   :  { %1032 = shalt.err (!%p1029_p9)
}
  0x18   :  { %65 = dma.hbm_to_vmem [thread:$0]  %s1411_s3, 256, %s60_s30, [#allocation11], %s1153_s10, %s1153_s10, %s1154_s11  }
  0x19   :  { %s1155_s17 = smov [#allocation4]   ;;  %s1156_s19 = smov [#allocation9]  }
  0x1a   :  { %s23_s18 = sshll.u32 %s1155_s17, 4  ;;  %s47_s20 = sshll.u32 %s1156_s19, 4  ;;  %s24_s18 = int_to_ptr.vmem [resolvable:$true] %s23_s18  ;;  %s48_s20 = int_to_ptr.vmem [resolvable:$true] %s47_s20 }
  0x1b   :  { %s1041_s1 = scalar_lea.vmem %s24_s18, 128  ;;  %p1046_p11 = scmp.lt.s32.totalorder %s24_s18, %s24_s18 }
  0x1c   :  { %p1042_p10 = scmp.ne.s32.totalorder %s24_s18, %s1041_s1  ;;  %p1047_p12 = scmp.lt.s32.totalorder %s1041_s1, %s1041_s1 }
  0x1e   :  { %p1048_p13 = por %p1047_p12, %p1046_p11 }
  0x20   :  { %p1049_p0 = pnand %p1048_p13, %p1042_p10 }
  0x22   :  { %1052 = shalt.err (!%p1049_p0)
}
  0x23   :  { %29 = dma.hbm_to_vmem [thread:$0]  %s1408_s0, 128, %s24_s18, [#allocation5], %s1153_s10, %s1153_s10, %s1154_s11  }
  0x24   :  { %s1061_s3 = scalar_lea.vmem %s48_s20, 256  ;;  %p1066_p2 = scmp.lt.s32.totalorder %s48_s20, %s48_s20 }
  0x25   :  { %p1062_p1 = scmp.ne.s32.totalorder %s48_s20, %s1061_s3  ;;  %p1067_p3 = scmp.lt.s32.totalorder %s1061_s3, %s1061_s3 }
  0x27   :  { %p1068_p4 = por %p1067_p3, %p1066_p2 }
  0x29   :  { %p1069_p5 = pnand %p1068_p4, %p1062_p1 }
  0x2b   :  { %1072 = shalt.err (!%p1069_p5)
}
  0x2c   :  { %53 = dma.hbm_to_vmem [thread:$0]  %s1410_s2, 256, %s48_s20, [#allocation8], %s1153_s10, %s1153_s10, %s1154_s11  }
  0x2d   :  { %s1157_s25 = smov [#allocation12]   ;;  %s1158_s27 = smov [#allocation13]  }
  0x2e   :  { %s73_s26 = sshll.u32 %s1157_s25, 4  ;;  %s85_s28 = sshll.u32 %s1158_s27, 4  ;;  %s74_s26 = int_to_ptr.vmem [resolvable:$true] %s73_s26  ;;  %s86_s28 = int_to_ptr.vmem [resolvable:$true] %s85_s28 }
  0x2f   :  { %s1081_s0 = scalar_lea.vmem %s74_s26, 256  ;;  %p1086_p7 = scmp.lt.s32.totalorder %s74_s26, %s74_s26 }
  0x30   :  { %p1082_p6 = scmp.ne.s32.totalorder %s74_s26, %s1081_s0  ;;  %p1087_p8 = scmp.lt.s32.totalorder %s1081_s0, %s1081_s0 }
  0x32   :  { %p1088_p9 = por %p1087_p8, %p1086_p7 }
  0x34   :  { %p1089_p10 = pnand %p1088_p9, %p1082_p6 }
  0x36   :  { %1092 = shalt.err (!%p1089_p10)
}
  0x37   :  { %79 = dma.hbm_to_vmem [thread:$0]  %s1413_s5, 256, %s74_s26, [#allocation11], %s1153_s10, %s1153_s10, %s1154_s11  }
  0x38   :  { %s1101_s2 = scalar_lea.vmem %s86_s28, 256  ;;  %p1106_p12 = scmp.lt.s32.totalorder %s86_s28, %s86_s28 }
  0x39   :  { %p1102_p11 = scmp.ne.s32.totalorder %s86_s28, %s1101_s2  ;;  %p1107_p13 = scmp.lt.s32.totalorder %s1101_s2, %s1101_s2 }
  0x3b   :  { %p1108_p0 = por %p1107_p13, %p1106_p12 }
  0x3d   :  { %p1109_p1 = pnand %p1108_p0, %p1102_p11 }
  0x3f   :  { %1112 = shalt.err (!%p1109_p1)
}
  0x40   :  { %91 = dma.hbm_to_vmem [thread:$0]  %s1414_s6, 256, %s86_s28, [#allocation14], %s1153_s10, %s1153_s10, %s1154_s11  }
  0x41   :  { %1137 = dma.done.wait [#allocation5], 128  }
  0x42   :  { %1138 = vsyncadd [#allocation5], 4294967168 }
  0x43   :  { %1139 = dma.done.wait [#allocation8], 1280  }
  0x44   :  { %1140 = vsyncadd [#allocation8], 4294966016 }
  0x45   :  { %1141 = dma.done.wait [#allocation11], 512  }
  0x46   :  { %1142 = vsyncadd [#allocation11], 4294966784 }
  0x47   :  { %1143 = dma.done.wait [#allocation14], 256  }
  0x48   :  { %1144 = vsyncadd [#allocation14], 4294967040  ;;  %v1159_v0 = vmov 0.0   ;;  %vm1160_vm0 = vmmov 0   ;;  %v1249_v1 = vld [vmem:[#allocation10] sm:$0xf] }
  0x49   :  { %850 = vmatprep.subr.bf16.mxu0 %v1159_v0  ;;  %854 = vmatprep.mubr.msk.bf16.mxu0 %vm1160_vm0, %v1159_v0  ;;  %v1251_v2 = vld [vmem:[#allocation10 + $0x4] sm:$0xf]  ;;  %v1253_v3 = vld [vmem:[#allocation10 + $0x8] sm:$0xf]  ;;  %v1255_v4 = vld [vmem:[#allocation10 + $0xc] sm:$0xf] }
  0x4a   :  { %858 = vmatprep.subr.bf16.mxu1 %v1159_v0  ;;  %862 = vmatprep.mubr.msk.bf16.mxu1 %vm1160_vm0, %v1159_v0  ;;  %v1257_v5 = vld [vmem:[#allocation13] sm:$0xf]  ;;  %v1259_v6 = vld [vmem:[#allocation13 + $0x4] sm:$0xf]  ;;  %v1261_v7 = vld [vmem:[#allocation13 + $0x8] sm:$0xf] }
  0x4b   :  { %v1263_v8 = vld [vmem:[#allocation13 + $0xc] sm:$0xf]  ;;  %v1265_v9 = vld [vmem:[#allocation9 + $0x8] sm:$0xff]   ;;  %v1268_v10 = vld [vmem:[#allocation9] sm:$0xff]   ;;  %vm156_vm1 = vcmask 261120   ;;  %s1161_s13 = smov 32  }
  0x4c   :  { %851 = vmatpush3.bf16.msra.mxu0 %v1265_v9  ;;  %v925_v11 = vld [vmem:[#allocation4] sm:$0xff]   ;;  %v1283_v33 = vld [vmem:[#allocation12 + $0x8] sm:$0xff]   ;;  %v1286_v34 = vld [vmem:[#allocation12] sm:$0xff]  }
  0x4d   :  { %852 = vmatprep.subr.bf16.mxu0 %v1159_v0  ;;  %v1275_v12 = vld [vmem:[%s1412_s4] ss:$0 sm:$0xff]  ;;  %859 = vmatpush3.bf16.msra.mxu1 %v1283_v33 }
  0x4e   :  { %860 = vmatprep.subr.bf16.mxu1 %v1159_v0  ;;  %v1296_v43 = vld [vmem:[%s1415_s7] ss:$0 sm:$0xff]  ;;  %s1314_s7 = smov 0  }
  0x50   :  { %853 = vmatpush3.bf16.msra.mxu0 %v1268_v10 }
  0x51   :  { %861 = vmatpush3.bf16.msra.mxu1 %v1286_v34 }
  0x53   :  { %855 = vmatmul.mubr.msk.bf16.vlgmr.msra.gmra.mxu0 %vm156_vm1, %v925_v11 }
 0x113   :  { %v194_v13 = vpop.f32.mrf.mxu0 }
 0x114   :  { %v195_v14 = vadd.f32 %v1275_v12, %v194_v13 }
 0x115   :  { %v856_v15 = vpop.f32.mrf.mxu0 }
 0x116   :  { %928 = vtanh.f32 %v195_v14  ;;  %v802_v21 = vmul.f32 -1.442695, %v195_v14 }
 0x117   :  { %v197_v16 = vpop.f32.mrf.mxu0 }
 0x118   :  { %v198_v17 = vadd.f32 %v1275_v12, %v197_v16 }
 0x119   :  { %v857_v18 = vpop.f32.mrf.mxu0 }
 0x11a   :  { %930 = vtanh.f32 %v198_v17  ;;  %v803_v22 = vmul.f32 -1.442695, %v198_v17 }
 0x11b   :  { %932 = vpow2.f32 %v802_v21 }
 0x11c   :  { %934 = vpow2.f32 %v803_v22 }
 0x123   :  { %v929_v19 = vpop.eup %928 }
 0x124   :  { %217 = vrot.lane.b32.xlu0 %v929_v19, %s1161_s13 }
 0x127   :  { %v931_v20 = vpop.eup %930 }
 0x128   :  { %219 = vrot.lane.b32.xlu0 %v931_v20, %s1161_s13  ;;  %v933_v23 = vpop.eup %932 }
 0x129   :  { %v207_v24 = vadd.f32 1.0, %v933_v23  ;;  %v935_v25 = vpop.eup %934 }
 0x12a   :  { %v208_v26 = vadd.f32 1.0, %v935_v25 }
 0x12b   :  { %936 = vrcp.f32 %v207_v24 }
 0x12c   :  { %938 = vrcp.f32 %v208_v26 }
 0x138   :  { %v937_v27 = vpop.eup %936 }
 0x139   :  { %v939_v30 = vpop.eup %938 }
 0x196   :  { %v218_v28 = vpop.permute.xlu0 %217 }
 0x197   :  { %v223_v29 = vmul.f32 %v937_v27, %v218_v28 }
 0x199   :  { %940 = vtanh.f32 %v223_v29  ;;  %247 = vst.msk [vmem:[#allocation3] sm:$0xff] %vm156_vm1, %v223_v29 }
 0x19a   :  { %v220_v31 = vpop.permute.xlu0 %219 }
 0x19b   :  { %v224_v32 = vmul.f32 %v939_v30, %v220_v31 }
 0x19d   :  { %942 = vtanh.f32 %v224_v32  ;;  %248 = vst.msk [vmem:[#allocation3 + $0x8] sm:$0xff] %vm156_vm1, %v224_v32 }
 0x1a6   :  { %v941_v35 = vpop.eup %940 }
 0x1a7   :  { %229 = vrot.lane.b32.xlu1 %v941_v35, %s1153_s10 }
 0x1aa   :  { %v943_v36 = vpop.eup %942 }
 0x1ab   :  { %231 = vrot.lane.b32.xlu1 %v943_v36, %s1153_s10 }
 0x219   :  { %v230_v37 = vpop.permute.xlu1 %229 }
 0x21a   :  { %v235_v39 = vmul.f32 %v937_v27, %v230_v37 }
 0x21d   :  { %v232_v38 = vpop.permute.xlu1 %231 }
 0x21e   :  { %v236_v40 = vmul.f32 %v939_v30, %v232_v38 }
 0x220   :  { %v249_v41 = vpack.c.bf16 %v236_v40, %v235_v39 }
 0x222   :  { %257 = vrot.lane.b32.xlu0 %v249_v41, %s1153_s10 }
 0x294   :  { %v258_v42 = vpop.permute.xlu0 %257 }
 0x295   :  { %863 = vmatmul.mubr.msk.bf16.vlgmr.msra.gmra.mxu1 %vm156_vm1, %v258_v42 }
 0x355   :  { %v308_v44 = vpop.f32.mrf.mxu1 }
 0x356   :  { %v309_v45 = vadd.f32 %v1296_v43, %v308_v44 }
 0x357   :  { %v864_v46 = vpop.f32.mrf.mxu1 }
 0x358   :  { %944 = vtanh.f32 %v309_v45  ;;  %v808_v52 = vmul.f32 -1.442695, %v309_v45 }
 0x359   :  { %v311_v47 = vpop.f32.mrf.mxu1 }
 0x35a   :  { %v312_v48 = vadd.f32 %v1296_v43, %v311_v47 }
 0x35b   :  { %v865_v49 = vpop.f32.mrf.mxu1 }
 0x35c   :  { %946 = vtanh.f32 %v312_v48  ;;  %v809_v53 = vmul.f32 -1.442695, %v312_v48 }
 0x35d   :  { %948 = vpow2.f32 %v808_v52 }
 0x35e   :  { %950 = vpow2.f32 %v809_v53 }
 0x365   :  { %v945_v50 = vpop.eup %944 }
 0x366   :  { %331 = vrot.lane.b32.xlu1 %v945_v50, %s1161_s13 }
 0x369   :  { %v947_v51 = vpop.eup %946 }
 0x36a   :  { %333 = vrot.lane.b32.xlu0 %v947_v51, %s1161_s13  ;;  %v949_v54 = vpop.eup %948 }
 0x36b   :  { %v321_v55 = vadd.f32 1.0, %v949_v54  ;;  %v951_v56 = vpop.eup %950 }
 0x36c   :  { %v322_v57 = vadd.f32 1.0, %v951_v56 }
 0x36d   :  { %952 = vrcp.f32 %v321_v55 }
 0x36e   :  { %954 = vrcp.f32 %v322_v57 }
 0x37a   :  { %v953_v58 = vpop.eup %952 }
 0x37b   :  { %v955_v61 = vpop.eup %954 }
 0x3d8   :  { %v332_v59 = vpop.permute.xlu1 %331 }
 0x3d9   :  { %v337_v60 = vmul.f32 %v953_v58, %v332_v59 }
 0x3db   :  { %956 = vtanh.f32 %v337_v60  ;;  %363 = vst.msk [vmem:[#allocation3 + $0x10] sm:$0xff] %vm156_vm1, %v337_v60 }
 0x3dc   :  { %v334_v62 = vpop.permute.xlu0 %333 }
 0x3dd   :  { %v338_v63 = vmul.f32 %v955_v61, %v334_v62 }
 0x3df   :  { %958 = vtanh.f32 %v338_v63  ;;  %364 = vst.msk [vmem:[#allocation3 + $0x18] sm:$0xff] %vm156_vm1, %v338_v63 }
 0x3e8   :  { %v957_v0 = vpop.eup %956 }
 0x3e9   :  { %343 = vrot.lane.b32.xlu1 %v957_v0, %s1153_s10 }
 0x3ec   :  { %v959_v11 = vpop.eup %958 }
 0x3ed   :  { %239 = vrot.lane.b32.xlu1 %v235_v39, %s1153_s10  ;;  %345 = vrot.lane.b32.xlu0 %v959_v11, %s1153_s10 }
 0x3f1   :  { %241 = vrot.lane.b32.xlu0 %v236_v40, %s1153_s10 }
 0x45b   :  { %v344_v13 = vpop.permute.xlu1 %343 }
 0x45c   :  { %v349_v14 = vmul.f32 %v953_v58, %v344_v13 }
 0x45e   :  { %353 = vrot.lane.b32.xlu1 %v349_v14, %s1153_s10 }
 0x45f   :  { %v240_v15 = vpop.permute.xlu1 %239  ;;  %v346_v16 = vpop.permute.xlu0 %345 }
 0x460   :  { %245 = vst.msk [vmem:[#allocation2] sm:$0xff] %vm156_vm1, %v240_v15  ;;  %v350_v17 = vmul.f32 %v955_v61, %v346_v16 }
 0x462   :  { %355 = vrot.lane.b32.xlu0 %v350_v17, %s1153_s10 }
 0x463   :  { %v242_v18 = vpop.permute.xlu0 %241 }
 0x464   :  { %246 = vst.msk [vmem:[#allocation2 + $0x8] sm:$0xff] %vm156_vm1, %v242_v18 }
 0x4d0   :  { %v354_v19 = vpop.permute.xlu1 %353 }
 0x4d1   :  { %360 = vst.msk [vmem:[#allocation2 + $0x10] sm:$0xff] %vm156_vm1, %v354_v19 }
 0x4d4   :  { %v356_v20 = vpop.permute.xlu0 %355 }
 0x4d5   :  { %361 = vst.msk [vmem:[#allocation2 + $0x18] sm:$0xff] %vm156_vm1, %v356_v20 }
 0x4d6 LB: > { %v813_v21 = vcombine.low %v1253_v3, %v1255_v4  ;;  %v1162_v22 = vmov 0.0   ;;  %v812_v23 = vcombine.low %v1249_v1, %v1251_v2  ;;  %v376_v24 = vld [vmem:[#allocation2] sm:$0xff]  ;;  %v377_v25 = vld [vmem:[#allocation2 + $0x8] sm:$0xff]  ;;  %s828_s15 = sshll.u32 %s1149_s7, 3  ;;  %vm1163_vm2 = vmmov 0   ;;  %s1164_s17 = smov 32   ;;  %s1149_s7 = sphi %s1314_s7, %s370_s7  }
 0x4d7   : > { %866 = vmatprep.subr.bf16.mxu0 %v1162_v22  ;;  %874 = vmatprep.subr.bf16.mxu1 %v1162_v22  ;;  %v500_v26 = vld [vmem:[#allocation3] sm:$0xff]  ;;  %s373_s16 = scalar_lea.vmem [#allocation7], %s828_s15  ;;  %v378_v27 = vpack.c.bf16 %v377_v25, %v376_v24  ;;  %v501_v29 = vld [vmem:[#allocation3 + $0x8] sm:$0xff]  ;;  %v820_v14 = vcombine.low %v1261_v7, %v1263_v8  ;;  %v819_v15 = vcombine.low %v1257_v5, %v1259_v6  ;;  %s1165_s18 = smov 64   ;;  %vm765_vm3 = vcmask 257024  }
 0x4d8   : > { %867 = vmatpush3.bf16.msra.mxu0 %v813_v21  ;;  %875 = vmatpush3.bf16.msra.mxu1 %v1265_v9  ;;  %v960_v28 = vld [vmem:[%s373_s16] sm:$0xff]   ;;  %v565_v16 = vld [vmem:[#allocation2 + $0x10] sm:$0xff]  ;;  %s1166_s19 = smov 96   ;;  %s764_s20 = scalar_lea.vmem [#allocation15], %s828_s15 }
 0x4d9   : > { %868 = vmatprep.subr.bf16.mxu0 %v1162_v22  ;;  %876 = vmatprep.subr.bf16.mxu1 %v1162_v22  ;;  %s370_s7 = sadd.s32 1, %s1149_s7  }
 0x4da   : > { %870 = vmatprep.mubr.msk.bf16.mxu0 %vm1163_vm2, %v1162_v22  ;;  %878 = vmatprep.mubr.msk.bf16.mxu1 %vm1163_vm2, %v1162_v22  ;;  %p367_p2 = scmp.ge.s32.totalorder %s370_s7, 8  }
 0x4db   : > { %504 = vrot.lane.b32.xlu1 %v500_v26, %s1164_s17  ;;  %s1167_s1 = smov (%p367_p2), [#allocation15]  }
 0x4dc   : > { %869 = vmatpush3.bf16.msra.mxu0 %v812_v23  ;;  %877 = vmatpush3.bf16.msra.mxu1 %v1268_v10  ;;  %v566_v17 = vld [vmem:[#allocation2 + $0x18] sm:$0xff]  ;;  %s773_s21 = sshll.u32 (%p367_p2), %s1167_s1, 4  ;;  %s774_s21 = int_to_ptr.vmem [resolvable:$true] %s773_s21 }
 0x4dd   : > { %882 = vmatprep.subr.bf16.mxu0 %v1162_v22  ;;  %890 = vmatprep.subr.bf16.mxu1 %v1162_v22  ;;  %v567_v19 = vpack.c.bf16 %v566_v17, %v565_v16  ;;  %s1113_s22 = scalar_lea.vmem (%p367_p2), %s774_s21, 1024  ;;  %p1118_p4 = scmp.lt.s32.totalorder (%p367_p2), %s774_s21, %s774_s21 }
 0x4de   :  { %p1114_p3 = scmp.ne.s32.totalorder (%p367_p2), %s774_s21, %s1113_s22  ;;  %p1119_p5 = scmp.lt.s32.totalorder (%p367_p2), %s1113_s22, %s1113_s22 }
 0x4df   : > { %871 = vmatmul.mubr.msk.bf16.vlgmr.msra.gmra.mxu0 %vm156_vm1, %v378_v27  ;;  %879 = vmatmul.mubr.msk.bf16.vlgmr.msra.gmra.mxu1 %vm156_vm1, %v960_v28 }
 0x4e0   : > { %506 = vrot.lane.b32.xlu1 %v501_v29, %s1164_s17  ;;  %891 = vmatpush3.bf16.msra.mxu1 %v1283_v33  ;;  %p1120_p6 = por (%p367_p2), %p1119_p5, %p1118_p4 }
 0x4e1   : > { %886 = vmatprep.mubr.msk.bf16.mxu0 %vm1163_vm2, %v1162_v22  ;;  %892 = vmatprep.subr.bf16.mxu1 %v1162_v22 }
 0x4e2   : > { %894 = vmatprep.mubr.msk.bf16.mxu1 %vm1163_vm2, %v1162_v22  ;;  %883 = vmatpush3.bf16.msra.mxu0 %v820_v14  ;;  %p1121_p7 = pnand (%p367_p2), %p1120_p6, %p1114_p3 }
 0x4e3   : > { %884 = vmatprep.subr.bf16.mxu0 %v1162_v22 }
 0x4e4   : > { %893 = vmatpush3.bf16.msra.mxu1 %v1286_v34 }
 0x4e6   : > { %885 = vmatpush3.bf16.msra.mxu0 %v819_v15 }
 0x4e9   : > { %887 = vmatmul.mubr.msk.bf16.vlgmr.msra.gmra.mxu0 %vm156_vm1, %v567_v19 }
 0x54d   : > { %v505_v59 = vpop.permute.xlu1 %504 }
 0x552   : > { %v507_v61 = vpop.permute.xlu1 %506 }
 0x59f   : > { %v428_v30 = vpop.f32.mrf.mxu0  ;;  %v477_v31 = vpop.f32.mrf.mxu1 }
 0x5a0   : > { %v478_v32 = vadd.f32 %v477_v31, %v428_v30 }
 0x5a1   : > { %v872_v35 = vpop.f32.mrf.mxu0  ;;  %v880_v36 = vpop.f32.mrf.mxu1 }
 0x5a2   : > { %v484_v37 = vadd.f32 %v1275_v12, %v478_v32 }
 0x5a3   : > { %v431_v38 = vpop.f32.mrf.mxu0  ;;  %v480_v39 = vpop.f32.mrf.mxu1 }
 0x5a4   : > { %961 = vtanh.f32 %v484_v37  ;;  %v481_v40 = vadd.f32 %v480_v39, %v431_v38  ;;  %v817_v47 = vmul.f32 -1.442695, %v484_v37 }
 0x5a5   : > { %v873_v41 = vpop.f32.mrf.mxu0  ;;  %v881_v42 = vpop.f32.mrf.mxu1 }
 0x5a6   : > { %v485_v44 = vadd.f32 %v1275_v12, %v481_v40  ;;  %v687_v42 = vld [vmem:[#allocation3 + $0x10] sm:$0xff] }
 0x5a8   : > { %963 = vtanh.f32 %v485_v44  ;;  %v818_v48 = vmul.f32 -1.442695, %v485_v44 }
 0x5a9   : > { %965 = vpow2.f32 %v817_v47  ;;  %v617_v27 = vpop.f32.mrf.mxu0 }
 0x5aa   : > { %967 = vpow2.f32 %v818_v48 }
 0x5ab   : > { %v888_v22 = vpop.f32.mrf.mxu0 }
 0x5ad   : > { %v620_v28 = vpop.f32.mrf.mxu0 }
 0x5af   : > { %v889_v29 = vpop.f32.mrf.mxu0 }
 0x5b1   : > { %v962_v45 = vpop.eup %961 }
 0x5b2   : > { %514 = vrot.lane.b32.xlu0 %v962_v45, %s1164_s17  ;;  %v688_v45 = vld [vmem:[#allocation3 + $0x18] sm:$0xff] }
 0x5b5   : > { %v964_v46 = vpop.eup %963 }
 0x5b6   : > { %516 = vrot.lane.b32.xlu0 %v964_v46, %s1164_s17  ;;  %v966_v49 = vpop.eup %965 }
 0x5b7   : > { %v492_v50 = vadd.f32 1.0, %v966_v49  ;;  %v968_v51 = vpop.eup %967 }
 0x5b8   : > { %v493_v52 = vadd.f32 1.0, %v968_v51 }
 0x5b9   : > { %969 = vrcp.f32 %v492_v50 }
 0x5ba   : > { %971 = vrcp.f32 %v493_v52 }
 0x5c6   : > { %v970_v53 = vpop.eup %969 }
 0x5c7   : > { %v972_v56 = vpop.eup %971  ;;  %v510_v60 = vmul.f32 %v970_v53, %v505_v59 }
 0x5c8   : > { %v511_v0 = vmul.f32 %v972_v56, %v507_v61 }
 0x624   : > { %v515_v54 = vpop.permute.xlu0 %514 }
 0x625   : > { %v520_v55 = vmul.f32 %v970_v53, %v515_v54 }
 0x627   : > { %524 = vrot.lane.b32.xlu0 %v520_v55, %s1164_s17 }
 0x628   : > { %v517_v57 = vpop.permute.xlu0 %516 }
 0x629   : > { %v521_v58 = vmul.f32 %v972_v56, %v517_v57 }
 0x62b   : > { %526 = vrot.lane.b32.xlu1 %v521_v58, %s1164_s17 }
 0x699   : > { %v525_v62 = vpop.permute.xlu0 %524 }
 0x69a   : > { %v1355_v63 = vadd.f32 %v525_v62, %v510_v60 }
 0x69c   : > { %973 = vtanh.f32 %v1355_v63 }
 0x69d   : > { %v527_v11 = vpop.permute.xlu1 %526 }
 0x69e   : > { %v1358_v13 = vadd.f32 %v527_v11, %v511_v0 }
 0x6a0   : > { %975 = vtanh.f32 %v1358_v13 }
 0x6a9   : > { %v974_v18 = vpop.eup %973 }
 0x6aa   : > { %536 = vrot.lane.b32.xlu0 %v974_v18, %s1164_s17 }
 0x6ad   : > { %v976_v20 = vpop.eup %975 }
 0x6ae   : > { %538 = vrot.lane.b32.xlu1 %v976_v20, %s1164_s17 }
 0x71c   : > { %v537_v21 = vpop.permute.xlu0 %536 }
 0x71d   : > { %v542_v24 = vmul.f32 %v970_v53, %v537_v21 }
 0x720   : > { %v539_v23 = vpop.permute.xlu1 %538 }
 0x721   : > { %v543_v25 = vmul.f32 %v972_v56, %v539_v23 }
 0x723   : > { %v564_v26 = vpack.c.bf16 %v543_v25, %v542_v24 }
 0x725   : > { %625 = vrot.lane.b32.xlu0 %v564_v26, %s1165_s18 }
 0x797   : > { %v626_v30 = vpop.permute.xlu0 %625 }
 0x798   : > { %895 = vmatmul.mubr.msk.bf16.vlgmr.msra.gmra.mxu1 %vm156_vm1, %v626_v30 }
 0x858   : > { %v664_v31 = vpop.f32.mrf.mxu1 }
 0x859   : > { %v665_v32 = vadd.f32 %v664_v31, %v617_v27 }
 0x85a   : > { %v896_v35 = vpop.f32.mrf.mxu1 }
 0x85b   : > { %v671_v36 = vadd.f32 %v1296_v43, %v665_v32 }
 0x85c   : > { %v667_v37 = vpop.f32.mrf.mxu1 }
 0x85d   : > { %977 = vtanh.f32 %v671_v36  ;;  %v668_v38 = vadd.f32 %v667_v37, %v620_v28  ;;  %v823_v46 = vmul.f32 -1.442695, %v671_v36 }
 0x85e   : > { %v897_v39 = vpop.f32.mrf.mxu1 }
 0x85f   : > { %v672_v40 = vadd.f32 %v1296_v43, %v668_v38 }
 0x861   : > { %979 = vtanh.f32 %v672_v40  ;;  %v824_v47 = vmul.f32 -1.442695, %v672_v40 }
 0x862   : > { %981 = vpow2.f32 %v823_v46 }
 0x863   : > { %983 = vpow2.f32 %v824_v47 }
 0x86a   : > { %v978_v41 = vpop.eup %977 }
 0x86b   : > { %701 = vrot.lane.b32.xlu1 %v978_v41, %s1164_s17 }
 0x86e   : > { %v980_v44 = vpop.eup %979 }
 0x86f   : > { %691 = vrot.lane.b32.xlu1 %v687_v42, %s1164_s17  ;;  %703 = vrot.lane.b32.xlu0 %v980_v44, %s1164_s17  ;;  %v982_v48 = vpop.eup %981 }
 0x870   : > { %v679_v49 = vadd.f32 1.0, %v982_v48  ;;  %v984_v50 = vpop.eup %983 }
 0x871   : > { %v680_v51 = vadd.f32 1.0, %v984_v50 }
 0x872   : > { %985 = vrcp.f32 %v679_v49 }
 0x873   : > { %693 = vrot.lane.b32.xlu0 %v688_v45, %s1164_s17  ;;  %987 = vrcp.f32 %v680_v51 }
 0x87f   : > { %v986_v52 = vpop.eup %985 }
 0x880   : > { %v988_v55 = vpop.eup %987 }
 0x8dd   : > { %v702_v53 = vpop.permute.xlu1 %701 }
 0x8de   : > { %v707_v54 = vmul.f32 %v986_v52, %v702_v53 }
 0x8e0   : > { %711 = vrot.lane.b32.xlu1 %v707_v54, %s1164_s17 }
 0x8e1   : > { %v704_v56 = vpop.permute.xlu0 %703  ;;  %v692_v58 = vpop.permute.xlu1 %691 }
 0x8e2   : > { %v708_v57 = vmul.f32 %v988_v55, %v704_v56  ;;  %v697_v59 = vmul.f32 %v986_v52, %v692_v58 }
 0x8e4   : > { %713 = vrot.lane.b32.xlu0 %v708_v57, %s1164_s17 }
 0x8e5   : > { %v694_v60 = vpop.permute.xlu0 %693 }
 0x8e6   : > { %v698_v0 = vmul.f32 %v988_v55, %v694_v60 }
 0x952   : > { %v712_v61 = vpop.permute.xlu1 %711 }
 0x953   : > { %v717_v62 = vadd.f32 %v712_v61, %v697_v59 }
 0x955   : > { %989 = vtanh.f32 %v717_v62 }
 0x956   : > { %v714_v11 = vpop.permute.xlu0 %713 }
 0x957   : > { %v718_v14 = vadd.f32 %v714_v11, %v698_v0 }
 0x959   : > { %991 = vtanh.f32 %v718_v14 }
 0x962   : > { %v990_v15 = vpop.eup %989 }
 0x963   : > { %723 = vrot.lane.b32.xlu1 %v990_v15, %s1164_s17 }
 0x966   : > { %v992_v16 = vpop.eup %991 }
 0x967   : > { %546 = vrot.lane.b32.xlu1 %v542_v24, %s1165_s18  ;;  %725 = vrot.lane.b32.xlu0 %v992_v16, %s1164_s17 }
 0x96b   : > { %556 = vrot.lane.b32.xlu1 %v1355_v63, %s1166_s19  ;;  %548 = vrot.lane.b32.xlu0 %v543_v25, %s1165_s18 }
 0x96f   : > { %743 = vrot.lane.b32.xlu1 %v717_v62, %s1166_s19  ;;  %558 = vrot.lane.b32.xlu0 %v1358_v13, %s1166_s19 }
 0x973   : > { %745 = vrot.lane.b32.xlu0 %v718_v14, %s1166_s19 }
 0x9d5   : > { %v724_v17 = vpop.permute.xlu1 %723 }
 0x9d6   : > { %v729_v18 = vmul.f32 %v986_v52, %v724_v17 }
 0x9d8   : > { %733 = vrot.lane.b32.xlu1 %v729_v18, %s1165_s18  ;;  %v829_v21 = vpack.c.bf16 %v729_v18, %v729_v18 }
 0x9d9   : > { %v547_v19 = vpop.permute.xlu1 %546  ;;  %v726_v20 = vpop.permute.xlu0 %725 }
 0x9da   : > { %552 = vst.msk [vmem:[#allocation2] sm:$0xff] %vm156_vm1, %v547_v19  ;;  %v730_v23 = vmul.f32 %v988_v55, %v726_v20 }
 0x9dc   : > { %757 = vrot.lane.b32.xlu1 %v829_v21, %s1165_s18  ;;  %735 = vrot.lane.b32.xlu0 %v730_v23, %s1165_s18  ;;  %v830_v25 = vpack.c.bf16 %v730_v23, %v730_v23 }
 0x9dd   : > { %v557_v63 = vpop.permute.xlu1 %556  ;;  %v549_v24 = vpop.permute.xlu0 %548 }
 0x9de   : > { %562 = vst.msk [vmem:[#allocation3] sm:$0xff] %vm156_vm1, %v557_v63  ;;  %553 = vst.msk [vmem:[#allocation2 + $0x8] sm:$0xff] %vm156_vm1, %v549_v24 }
 0x9e0   : > { %759 = vrot.lane.b32.xlu0 %v830_v25, %s1165_s18 }
 0x9e1   : > { %v744_v13 = vpop.permute.xlu1 %743  ;;  %v559_v26 = vpop.permute.xlu0 %558 }
 0x9e2   : > { %749 = vst.msk [vmem:[#allocation3 + $0x10] sm:$0xff] %vm156_vm1, %v744_v13  ;;  %563 = vst.msk [vmem:[#allocation3 + $0x8] sm:$0xff] %vm156_vm1, %v559_v26 }
 0x9e5   : > { %v746_v27 = vpop.permute.xlu0 %745 }
 0x9e6   : > { %750 = vst.msk [vmem:[#allocation3 + $0x18] sm:$0xff] %vm156_vm1, %v746_v27 }
 0xa4a   : > { %v734_v22 = vpop.permute.xlu1 %733 }
 0xa4b   : > { %739 = vst.msk [vmem:[#allocation2 + $0x10] sm:$0xff] %vm156_vm1, %v734_v22 }
 0xa4e   : > { %v758_v28 = vpop.permute.xlu1 %757  ;;  %v736_v29 = vpop.permute.xlu0 %735 }
 0xa4f   : > { %766 = vst.msk [vmem:[%s764_s20] sm:$0xf] %vm765_vm3, %v758_v28  ;;  %369 = sbr.rel (!%p367_p2) target bundleno = 1238 (0x4d6), region = 87 }
 0xa50   : > { %740 = vst.msk [vmem:[#allocation2 + $0x18] sm:$0xff] %vm156_vm1, %v736_v29 }
 0xa52   : > { %v760_v30 = vpop.permute.xlu0 %759 }
 0xa53   : > { %767 = vst.msk [vmem:[%s764_s20 + $0x4] sm:$0xf] %vm765_vm3, %v760_v30 }
 0xa54   :  { %1124 = shalt.err (!%p1121_p7)
}
 0xa55   :  { %779 = dma.vmem_to_hbm [thread:$0]  %s774_s21, 1024, %s1416_s8, [#allocation6], %s1153_s10, %s1153_s10, %s1154_s11  }
 0xa56   :  { %1145 = dma.done.wait [#allocation6], 1024  }
 0xa57   :  { %1146 = vsyncadd [#allocation6], 4294966272 }
 0xa58   :  { %783 = vsyncpa [#allocation5], 1 }
 0xa59   :  { %784 = vsyncpa [#allocation8], 1 }
 0xa5a   :  { %785 = vsyncpa [#allocation11], 1 }
 0xa5b   :  { %786 = vsyncpa [#allocation14], 1 }
 0xa5c   :  { %787 = vsyncpa [#allocation6], 1 }

</bundles_post_ra>
